<compile_context>
chip_gen: v7x
topology: tpu7x:2x2x1
jax: 0.10.0
libtpu: 0.0.40
codegen_flags: <defaults>
</compile_context>

<pallas_src>
import jax
import jax.numpy as jnp
from jax.experimental import pallas as pl
from jax.experimental.pallas import tpu as pltpu

LANE = 128


def _round_up(n, m):
    return ((n + m - 1) // m) * m


# ---------------------------------------------------------------------------
# Index helper (identical semantics to the PyTorch vec_to_inds)
# ---------------------------------------------------------------------------
def vec_to_inds(x_dim, vec_dim):
    """Indices of scale_tril coeffs, filled main diagonal first."""
    ldiag, d, c = (x_dim, 0, 0)
    inds = [[], []]
    for _ in range(vec_dim - x_dim):
        inds[0].append(c + d)
        inds[1].append(c)
        if c == ldiag - 1:
            ldiag += -1
            c = 0
            d += 1
        else:
            c += 1
    return inds


# ---------------------------------------------------------------------------
# Pallas kernel: FcZero forward (ReZero residual MLP + output linear),
# one batch tile per grid step.
# ---------------------------------------------------------------------------
def fczero_kernel(x_ref, wh_ref, bh_ref, alphas_ref, wo_ref, bo_ref, loc_ref):
    # x_ref:      (TB, D)         VMEM  batch tile of inputs
    # wh_ref:     (L, D, D)       VMEM  stacked hidden weights (in, out) - resident
    # bh_ref:     (L, 1, D)       VMEM  stacked hidden biases            - resident
    # alphas_ref: (L,)            SMEM  ReZero scalars
    # wo_ref:     (D, Dout_pad)   VMEM  output weight (zero-padded to 128 lanes)
    # bo_ref:     (1, Dout_pad)   VMEM  output bias   (zero-padded to 128 lanes)
    # loc_ref:    (TB, Dout_pad)  VMEM  lane-dense output tile
    h = x_ref[...].astype(jnp.float32)
    n_hidden = wh_ref.shape[0]
    # Static, tiny trip count. If L ever grows beyond a handful, switch to
    # lax.fori_loop(..., unroll=True) with dynamic wh_ref[l] indexing.
    for l in range(n_hidden):
        z = jnp.dot(h.astype(wh_ref.dtype), wh_ref[l],
                    preferred_element_type=jnp.float32) + bh_ref[l].astype(jnp.float32)
        # LeakyReLU with PyTorch default negative_slope = 0.01
        z = jnp.where(z >= 0.0, z, 0.01 * z)
        h = h + alphas_ref[l] * z                      # ReZero residual
    loc = jnp.dot(h.astype(wo_ref.dtype), wo_ref[...],
                  preferred_element_type=jnp.float32) + bo_ref[...].astype(jnp.float32)
    loc_ref[...] = loc.astype(loc_ref.dtype)


def fczero_pallas(x, w_hidden, b_hidden, alphas, w_out, b_out, *, block_b=None):
    B, D = x.shape
    n_hidden = w_hidden.shape[0]
    x_dim = w_out.shape[-1]

    # --- lane-dense output: pad the output projection to a multiple of 128 ---
    d_out_p = _round_up(max(x_dim, LANE), LANE)
    w_out_p = jnp.zeros((D, d_out_p), w_out.dtype).at[:, :x_dim].set(w_out)
    b_out_p = jnp.zeros((1, d_out_p), b_out.dtype).at[:, :x_dim].set(
        b_out.reshape(1, x_dim))

    # --- batch tile: MXU-aligned for big B, sublane-rounded otherwise ---
    if block_b is None:
        block_b = 512 if B >= 512 else _round_up(B, 8)
    block_b = max(8, _round_up(block_b, 8))

    # Crude VMEM budget guard (keeps tiles far under every generation's scoped
    # limit, incl. v7x's 64 MiB physical / 32 MiB default).
    def _vmem_est(tb):
        tiles = 2 * tb * (D + d_out_p) * 4                       # double-buffered x/out
        weights = (n_hidden * D * D + n_hidden * D
                   + D * d_out_p + d_out_p) * 4                   # resident params
        return tiles + 2 * weights
    while _vmem_est(block_b) > (8 << 20) and block_b > 8:
        block_b //= 2
    block_b = max(8, _round_up(block_b, 8))

    # Pad B to a tile multiple; padded rows are computed and discarded below.
    B_pad = _round_up(B, block_b)
    if B_pad != B:
        x = jnp.pad(x, ((0, B_pad - B), (0, 0)))

    grid = (B_pad // block_b,)

    # TODO(synk): if D/L ever grow so the stacked (L, D, D) weights no longer fit
    # VMEM, pass them with memory_space=pl.ANY and stream per-layer tiles with
    # pltpu.make_async_copy instead of keeping them resident.
    out = pl.pallas_call(
        fczero_kernel,
        out_shape=jax.ShapeDtypeStruct((B_pad, d_out_p), jnp.float32),
        grid=grid,
        in_specs=[
            pl.BlockSpec((block_b, D), lambda i: (i, 0)),          # x: batch-tiled
            pl.BlockSpec((n_hidden, D, D), lambda i: (0, 0, 0)),   # w_hidden: resident
            pl.BlockSpec((n_hidden, 1, D), lambda i: (0, 0, 0)),   # b_hidden: resident
            pl.BlockSpec(memory_space=pltpu.MemorySpace.SMEM),     # alphas scalars
            pl.BlockSpec((D, d_out_p), lambda i: (0, 0)),          # w_out: resident
            pl.BlockSpec((1, d_out_p), lambda i: (0, 0)),          # b_out: resident
        ],
        out_specs=pl.BlockSpec((block_b, d_out_p), lambda i: (i, 0)),
        compiler_params=pltpu.CompilerParams(
            dimension_semantics=("parallel",),   # megacore sharding on v7x
        ),
    )(x, w_hidden, b_hidden, alphas, w_out_p, b_out_p)

    return out[:B, :x_dim]


# ---------------------------------------------------------------------------
# Pure-JAX reference (also the tiny-batch fallback path)
# ---------------------------------------------------------------------------
def ref_fczero(x, w_hidden, b_hidden, alphas, w_out, b_out):
    h = x
    for l in range(w_hidden.shape[0]):
        z = h @ w_hidden[l] + b_hidden[l]
        z = jnp.where(z >= 0.0, z, 0.01 * z)
        h = h + alphas[l] * z
    return h @ w_out + b_out


# ---------------------------------------------------------------------------
# Full module forward: returns (loc, scale_tril) parametrizing the Gaussian
# ---------------------------------------------------------------------------
def fczero_mu_cst_lambda_cpdf_forward(x, params, x_dim, *, use_pallas=None,
                                      block_b=None):
    B = x.shape[0]
    if use_pallas is None:
        # Tiny batches are pure launch/DMA overhead for a custom kernel; let
        # XLA fuse the three small matmuls instead.
        use_pallas = B >= 256
    if use_pallas:
        loc = fczero_pallas(x, params["w_hidden"], params["b_hidden"],
                            params["alphas"], params["w_out"], params["b_out"],
                            block_b=block_b)
    else:
        loc = ref_fczero(x, params["w_hidden"], params["b_hidden"],
                         params["alphas"], params["w_out"], params["b_out"])

    # Gaussian parametrization glue: scale_vec is a constant parameter, so the
    # lower-triangular factor is batch-independent -> build it once (x_dim, x_dim)
    # and only broadcast lazily at the end.
    scale_vec = params["scale_vec"]                      # (vec_dim - x_dim,)
    vec_dim = x_dim + scale_vec.shape[0]
    if vec_dim == x_dim + 1:
        tril = jnp.exp(scale_vec[0]) * jnp.eye(x_dim, dtype=jnp.float32)
    else:
        inds = vec_to_inds(x_dim, vec_dim)
        lbda = jnp.concatenate(
            [jnp.exp(scale_vec[:x_dim]), scale_vec[x_dim:]], axis=0)
        tril = jnp.zeros((x_dim, x_dim), jnp.float32).at[
            (jnp.array(inds[0]), jnp.array(inds[1]))].set(lbda)
    scale_tril = jnp.broadcast_to(tril, (B, x_dim, x_dim))
    return loc, scale_tril


# ---------------------------------------------------------------------------
if __name__ == "__main__":
    # Module hyperparameters: FcZero_mu_cst_Lambda_cpdf(layers, vec_dim)
    layers = [32, 32, 32, 4]           # hidden dims must match for ReZero residual
    x_dim = layers[-1]                 # 4
    vec_dim = x_dim + x_dim * (x_dim + 1) // 2   # 14 -> full lower-triangular scale
    D = layers[0]
    n_hidden = len(layers) - 2         # 2 residual hidden linears

    key = jax.random.PRNGKey(0)
    k = jax.random.split(key, 8)

    bound = 1.0 / jnp.sqrt(D)
    params = {
        # stacked hidden Linear weights, stored (in, out)
        "w_hidden": jax.random.uniform(k[0], (n_hidden, D, D), jnp.float32, -bound, bound),
        "b_hidden": jax.random.uniform(k[1], (n_hidden, 1, D), jnp.float32, -bound, bound),
        # PyTorch initializes alphas / scale_vec to zeros; use small nonzero
        # values so the residual path is actually exercised.
        "alphas": 0.1 * jax.random.normal(k[2], (n_hidden,), jnp.float32),
        "w_out": jax.random.uniform(k[3], (D, x_dim), jnp.float32, -bound, bound),
        "b_out": jax.random.uniform(k[4], (1, x_dim), jnp.float32, -bound, bound),
        "scale_vec": 0.1 * jax.random.normal(k[5], (vec_dim - x_dim,), jnp.float32),
    }

    # --- small demo batch (forces the Pallas path so the kernel is exercised) ---
    B = 2
    x = jax.random.normal(k[6], (B, D), jnp.float32)
    loc, scale_tril = fczero_mu_cst_lambda_cpdf_forward(x, params, x_dim,
                                                        use_pallas=True)
    jax.block_until_ready((loc, scale_tril))

    loc_ref = ref_fczero(x, params["w_hidden"], params["b_hidden"],
                         params["alphas"], params["w_out"], params["b_out"])
    assert loc.shape == (B, x_dim)
    assert scale_tril.shape == (B, x_dim, x_dim)
    assert jnp.allclose(loc, loc_ref, atol=1e-5, rtol=1e-5)
    # scale_tril must be lower triangular with positive (exp'd) diagonal
    assert jnp.allclose(scale_tril, jnp.tril(scale_tril))
    assert bool(jnp.all(jnp.diagonal(scale_tril, axis1=-2, axis2=-1) > 0))

    # --- multi-tile grid path: non-multiple batch exercises padding + grid ---
    B2 = 300
    x2 = jax.random.normal(k[7], (B2, D), jnp.float32)
    loc2, scale_tril2 = fczero_mu_cst_lambda_cpdf_forward(
        x2, params, x_dim, use_pallas=True, block_b=128)   # grid=(3,), B padded to 384
    jax.block_until_ready((loc2, scale_tril2))
    loc2_ref = ref_fczero(x2, params["w_hidden"], params["b_hidden"],
                          params["alphas"], params["w_out"], params["b_out"])
    assert loc2.shape == (B2, x_dim)
    assert scale_tril2.shape == (B2, x_dim, x_dim)
    assert jnp.allclose(loc2, loc2_ref, atol=1e-5, rtol=1e-5)

    print("KERNEL_OK")
</pallas_src>

<mosaic_0001>
module attributes {stable_mosaic.version = 11 : i64} {
  func.func @fczero_kernel(%arg0: i32, %arg1: memref<8x32xf32, #tpu.memory_space<vmem>>, %arg2: memref<2x32x32xf32, #tpu.memory_space<vmem>>, %arg3: memref<2x1x32xf32, #tpu.memory_space<vmem>>, %arg4: memref<2xf32, #tpu.memory_space<smem>>, %arg5: memref<32x128xf32, #tpu.memory_space<vmem>>, %arg6: memref<1x128xf32, #tpu.memory_space<vmem>>, %arg7: memref<8x128xf32, #tpu.memory_space<vmem>>) attributes {dimension_semantics = [#tpu.dimension_semantics<parallel>], iteration_bounds = array<i64: 1>, scalar_prefetch = 0 : i64, scratch_operands = 0 : i64, tpu.core_type = #tpu.core_type<tc>, window_params = [{transform_indices = @transform_0, window_bounds = array<i64: 8, 32>}, {pipeline_mode = #tpu.pipeline_mode<synchronous>, transform_indices = @transform_1, window_bounds = array<i64: 2, 32, 32>}, {pipeline_mode = #tpu.pipeline_mode<synchronous>, transform_indices = @transform_2, window_bounds = array<i64: 2, 1, 32>}, {transform_indices = @transform_3, window_bounds = array<i64: 2>}, {pipeline_mode = #tpu.pipeline_mode<synchronous>, transform_indices = @transform_4, window_bounds = array<i64: 32, 128>}, {pipeline_mode = #tpu.pipeline_mode<synchronous>, transform_indices = @transform_5, window_bounds = array<i64: 1, 128>}, {transform_indices = @transform_6, window_bounds = array<i64: 8, 128>}]} {
    %c0 = arith.constant 0 : index
    %c0_0 = arith.constant 0 : index
    %0 = vector.load %arg1[%c0, %c0_0] : memref<8x32xf32, #tpu.memory_space<vmem>>, vector<8x32xf32>
    %c0_1 = arith.constant 0 : index
    %c0_2 = arith.constant 0 : index
    %c0_3 = arith.constant 0 : index
    %1 = vector.load %arg2[%c0_1, %c0_2, %c0_3] : memref<2x32x32xf32, #tpu.memory_space<vmem>>, vector<1x32x32xf32>
    %2 = vector.shape_cast %1 : vector<1x32x32xf32> to vector<32x32xf32>
    %cst = arith.constant dense<0.000000e+00> : vector<8x32xf32>
    %3 = tpu.matmul %0, %2, %cst {dimension_numbers = #tpu.dot_dimension_numbers<[1], [0], [0], [1], [0, 0, 1, 1], [], []>} : vector<8x32xf32>, vector<32x32xf32>, vector<8x32xf32> -> vector<8x32xf32>
    %c0_4 = arith.constant 0 : index
    %c0_5 = arith.constant 0 : index
    %c0_6 = arith.constant 0 : index
    %4 = vector.load %arg3[%c0_4, %c0_5, %c0_6] : memref<2x1x32xf32, #tpu.memory_space<vmem>>, vector<1x1x32xf32>
    %5 = vector.shape_cast %4 : vector<1x1x32xf32> to vector<1x32xf32>
    %6 = vector.broadcast %5 : vector<1x32xf32> to vector<8x32xf32>
    %7 = arith.addf %3, %6 : vector<8x32xf32>
    %cst_7 = arith.constant 0.000000e+00 : f32
    %8 = vector.broadcast %cst_7 : f32 to vector<8x32xf32>
    %9 = arith.cmpf oge, %7, %8 : vector<8x32xf32>
    %cst_8 = arith.constant 0.00999999977 : f32
    %10 = vector.broadcast %cst_8 : f32 to vector<8x32xf32>
    %11 = arith.mulf %10, %7 : vector<8x32xf32>
    %12 = arith.select %9, %7, %11 : vector<8x32xi1>, vector<8x32xf32>
    %c0_9 = arith.constant 0 : index
    %13 = memref.load %arg4[%c0_9] : memref<2xf32, #tpu.memory_space<smem>>
    %14 = vector.broadcast %13 : f32 to vector<8x32xf32>
    %15 = arith.mulf %14, %12 : vector<8x32xf32>
    %16 = arith.addf %0, %15 : vector<8x32xf32>
    %c1 = arith.constant 1 : index
    %c0_10 = arith.constant 0 : index
    %c0_11 = arith.constant 0 : index
    %17 = vector.load %arg2[%c1, %c0_10, %c0_11] : memref<2x32x32xf32, #tpu.memory_space<vmem>>, vector<1x32x32xf32>
    %18 = vector.shape_cast %17 : vector<1x32x32xf32> to vector<32x32xf32>
    %cst_12 = arith.constant dense<0.000000e+00> : vector<8x32xf32>
    %19 = tpu.matmul %16, %18, %cst_12 {dimension_numbers = #tpu.dot_dimension_numbers<[1], [0], [0], [1], [0, 0, 1, 1], [], []>} : vector<8x32xf32>, vector<32x32xf32>, vector<8x32xf32> -> vector<8x32xf32>
    %c1_13 = arith.constant 1 : index
    %c0_14 = arith.constant 0 : index
    %c0_15 = arith.constant 0 : index
    %20 = vector.load %arg3[%c1_13, %c0_14, %c0_15] : memref<2x1x32xf32, #tpu.memory_space<vmem>>, vector<1x1x32xf32>
    %21 = vector.shape_cast %20 : vector<1x1x32xf32> to vector<1x32xf32>
    %22 = vector.broadcast %21 : vector<1x32xf32> to vector<8x32xf32>
    %23 = arith.addf %19, %22 : vector<8x32xf32>
    %cst_16 = arith.constant 0.000000e+00 : f32
    %24 = vector.broadcast %cst_16 : f32 to vector<8x32xf32>
    %25 = arith.cmpf oge, %23, %24 : vector<8x32xf32>
    %cst_17 = arith.constant 0.00999999977 : f32
    %26 = vector.broadcast %cst_17 : f32 to vector<8x32xf32>
    %27 = arith.mulf %26, %23 : vector<8x32xf32>
    %28 = arith.select %25, %23, %27 : vector<8x32xi1>, vector<8x32xf32>
    %c1_18 = arith.constant 1 : index
    %29 = memref.load %arg4[%c1_18] : memref<2xf32, #tpu.memory_space<smem>>
    %30 = vector.broadcast %29 : f32 to vector<8x32xf32>
    %31 = arith.mulf %30, %28 : vector<8x32xf32>
    %32 = arith.addf %16, %31 : vector<8x32xf32>
    %c0_19 = arith.constant 0 : index
    %c0_20 = arith.constant 0 : index
    %33 = vector.load %arg5[%c0_19, %c0_20] : memref<32x128xf32, #tpu.memory_space<vmem>>, vector<32x128xf32>
    %cst_21 = arith.constant dense<0.000000e+00> : vector<8x128xf32>
    %34 = tpu.matmul %32, %33, %cst_21 {dimension_numbers = #tpu.dot_dimension_numbers<[1], [0], [0], [1], [0, 0, 1, 1], [], []>} : vector<8x32xf32>, vector<32x128xf32>, vector<8x128xf32> -> vector<8x128xf32>
    %c0_22 = arith.constant 0 : index
    %c0_23 = arith.constant 0 : index
    %35 = vector.load %arg6[%c0_22, %c0_23] : memref<1x128xf32, #tpu.memory_space<vmem>>, vector<1x128xf32>
    %36 = vector.broadcast %35 : vector<1x128xf32> to vector<8x128xf32>
    %37 = arith.addf %34, %36 : vector<8x128xf32>
    %c0_24 = arith.constant 0 : index
    %c0_25 = arith.constant 0 : index
    %38 = vector.load %arg7[%c0_24, %c0_25] : memref<8x128xf32, #tpu.memory_space<vmem>>, vector<8x128xf32>
    tpu.vector_store %arg7[%c0_24, %c0_25], %37 {strides = array<i32>} : memref<8x128xf32, #tpu.memory_space<vmem>>, vector<8x128xf32>,
    return
  }
  func.func @transform_0(%arg0: i32) -> (i32, i32) {
    %c0_i32 = arith.constant 0 : i32
    %c0_i32_0 = arith.constant 0 : i32
    return %arg0, %c0_i32 : i32, i32
  }
  func.func @transform_1(%arg0: i32) -> (i32, i32, i32) {
    %c0_i32 = arith.constant 0 : i32
    %c0_i32_0 = arith.constant 0 : i32
    %c0_i32_1 = arith.constant 0 : i32
    %c0_i32_2 = arith.constant 0 : i32
    return %c0_i32, %c0_i32_0, %c0_i32_1 : i32, i32, i32
  }
  func.func @transform_2(%arg0: i32) -> (i32, i32, i32) {
    %c0_i32 = arith.constant 0 : i32
    %c0_i32_0 = arith.constant 0 : i32
    %c0_i32_1 = arith.constant 0 : i32
    %c0_i32_2 = arith.constant 0 : i32
    return %c0_i32, %c0_i32_0, %c0_i32_1 : i32, i32, i32
  }
  func.func @transform_3(%arg0: i32) -> i32 {
    %c0_i32 = arith.constant 0 : i32
    %c0_i32_0 = arith.constant 0 : i32
    return %c0_i32 : i32
  }
  func.func @transform_4(%arg0: i32) -> (i32, i32) {
    %c0_i32 = arith.constant 0 : i32
    %c0_i32_0 = arith.constant 0 : i32
    %c0_i32_1 = arith.constant 0 : i32
    return %c0_i32, %c0_i32_0 : i32, i32
  }
  func.func @transform_5(%arg0: i32) -> (i32, i32) {
    %c0_i32 = arith.constant 0 : i32
    %c0_i32_0 = arith.constant 0 : i32
    %c0_i32_1 = arith.constant 0 : i32
    return %c0_i32, %c0_i32_0 : i32, i32
  }
  func.func @transform_6(%arg0: i32) -> (i32, i32) {
    %c0_i32 = arith.constant 0 : i32
    %c0_i32_0 = arith.constant 0 : i32
    return %arg0, %c0_i32 : i32, i32
  }
}

</mosaic_0001>

<bundles_post_ra>
// kernel: tpu_custom_call.1
= control target key start
LH: loop header
LB: loop body
LE: loop exit
PB: predicated region body
PF: predicated region fallthrough
CT: control target
= control target key end

     0   :  { %11 = vsyncpa [#allocation3], 0  ;;  %s672_s0 = inlined_call_operand.hbm [shape: f32[8,32], index: 0, kind: input, shape index: {}]   ;;  %s673_s1 = inlined_call_operand.hbm [shape: f32[2,32,32], index: 1, kind: input, shape index: {}]   ;;  %s674_s2 = inlined_call_operand.vmem [shape: f32[2,1,32], index: 2, kind: input, shape index: {}]   ;;  %s675_s3 = inlined_call_operand.vmem [shape: f32[2], index: 3, kind: input, shape index: {}]   ;;  %s676_s4 = inlined_call_operand.hbm [shape: f32[32,128], index: 4, kind: input, shape index: {}]   ;;  %s677_s5 = inlined_call_operand.vmem [shape: f32[1,128], index: 5, kind: input, shape index: {}]   ;;  %s678_s6 = inlined_call_operand.hbm [shape: f32[8,128], index: 6, kind: output, shape index: {}]  }
   0x1   :  { %12 = vsyncpa [#allocation7], 0 }
   0x2   :  { %13 = vsyncpa [#allocation5], 0 }
   0x3   :  { %14 = vsyncpa [#allocation4], 0  ;;  %s558_s21 = smov [#allocation6]   ;;  %s448_s25 = scalar_lea.hbm %s673_s1, 1024 }
   0x4   :  { %s30_s22 = sshll.u32 %s558_s21, 4  ;;  %p449_p0 = scmp.ne.s32.totalorder %s673_s1, %s448_s25  ;;  %s31_s22 = int_to_ptr.vmem [resolvable:$true] %s30_s22 }
   0x5   :  { %p452_p1 = scmp.lt.u32.totalorder %s448_s25, %s673_s1 }
   0x7   :  { %p454_p2 = pnand %p452_p1, %p449_p0 }
   0x9   :  { %457 = shalt.err (!%p454_p2)
}
   0xa   :  { %s458_s30 = scalar_lea.vmem %s31_s22, 1024  ;;  %p463_p4 = scmp.lt.s32.totalorder %s31_s22, %s31_s22 }
   0xb   :  { %p459_p3 = scmp.ne.s32.totalorder %s31_s22, %s458_s30  ;;  %p464_p5 = scmp.lt.s32.totalorder %s458_s30, %s458_s30 }
   0xd   :  { %p465_p6 = por %p464_p5, %p463_p4 }
   0xf   :  { %p466_p7 = pnand %p465_p6, %p459_p3 }
  0x11   :  { %469 = shalt.err (!%p466_p7)
}
  0x12   :  { %s559_s7 = smov 128   ;;  %s560_s8 = smov 8  }
  0x13   :  { %36 = dma.hbm_to_vmem [thread:$0]  %s673_s1, 1024, %s31_s22, [#allocation7], %s559_s7, %s559_s7, %s560_s8  }
  0x14   :  { %s561_s11 = smov [#allocation2]   ;;  %s45_s15 = sshll.u32 %s675_s3, 4  ;;  %s46_s15 = int_to_ptr.vmem [resolvable:$true] %s45_s15 }
  0x15   :  { %s21_s12 = sshll.u32 %s561_s11, 4  ;;  %s470_s18 = scalar_lea.hbm %s672_s0, 128  ;;  %s22_s12 = int_to_ptr.vmem [resolvable:$true] %s21_s12 }
  0x16   :  { %p471_p8 = scmp.ne.s32.totalorder %s672_s0, %s470_s18  ;;  %p474_p9 = scmp.lt.u32.totalorder %s470_s18, %s672_s0 }
  0x18   :  { %p476_p10 = pnand %p474_p9, %p471_p8 }
  0x1a   :  { %479 = shalt.err (!%p476_p10)
}
  0x1b   :  { %s480_s1 = scalar_lea.vmem %s22_s12, 128  ;;  %p485_p12 = scmp.lt.s32.totalorder %s22_s12, %s22_s12 }
  0x1c   :  { %p481_p11 = scmp.ne.s32.totalorder %s22_s12, %s480_s1  ;;  %p486_p13 = scmp.lt.s32.totalorder %s480_s1, %s480_s1 }
  0x1e   :  { %p487_p0 = por %p486_p13, %p485_p12 }
  0x20   :  { %p488_p1 = pnand %p487_p0, %p481_p11 }
  0x22   :  { %491 = shalt.err (!%p488_p1)
}
  0x23   :  { %24 = dma.hbm_to_vmem [thread:$0]  %s672_s0, 128, %s22_s12, [#allocation3]  }
  0x24   :  { %s492_s24 = scalar_lea.vmem %s46_s15, 16  ;;  %p497_p3 = scmp.lt.s32.totalorder %s46_s15, %s46_s15 }
  0x25   :  { %p493_p2 = scmp.ne.s32.totalorder %s46_s15, %s492_s24  ;;  %p498_p4 = scmp.lt.s32.totalorder %s492_s24, %s492_s24 }
  0x27   :  { %p499_p5 = por %p498_p4, %p497_p3 }
  0x29   :  { %p500_p6 = pnand %p499_p5, %p493_p2 }
  0x2b   :  { %503 = shalt.err (!%p500_p6)
}
  0x2c   :  { %s562_s25 = smov [#allocation8]   ;;  %s563_s26 = smov [#allocation9]  }
  0x2d   :  { %48 = dma.vmem_to_smem %s46_s15, 16, %s562_s25, [#allocation5]  }
  0x2e   :  { %s54_s27 = sshll.u32 %s563_s26, 4  ;;  %s504_s30 = scalar_lea.hbm %s676_s4, 512  ;;  %s55_s27 = int_to_ptr.vmem [resolvable:$true] %s54_s27 }
  0x2f   :  { %p505_p7 = scmp.ne.s32.totalorder %s676_s4, %s504_s30  ;;  %p508_p8 = scmp.lt.u32.totalorder %s504_s30, %s676_s4 }
  0x31   :  { %p510_p9 = pnand %p508_p8, %p505_p7 }
  0x33   :  { %513 = shalt.err (!%p510_p9)
}
  0x34   :  { %s514_s12 = scalar_lea.vmem %s55_s27, 512  ;;  %p519_p11 = scmp.lt.s32.totalorder %s55_s27, %s55_s27 }
  0x35   :  { %p515_p10 = scmp.ne.s32.totalorder %s55_s27, %s514_s12  ;;  %p520_p12 = scmp.lt.s32.totalorder %s514_s12, %s514_s12 }
  0x37   :  { %p521_p13 = por %p520_p12, %p519_p11 }
  0x39   :  { %p522_p0 = pnand %p521_p13, %p515_p10 }
  0x3b   :  { %525 = shalt.err (!%p522_p0)
}
  0x3c   :  { %60 = dma.hbm_to_vmem [thread:$0]  %s676_s4, 512, %s55_s27, [#allocation7], %s559_s7, %s559_s7, %s560_s8  }
  0x3d   :  { %548 = dma.done.wait [#allocation3], 128  }
  0x3e   :  { %549 = vsyncadd [#allocation3], 4294967168 }
  0x3f   :  { %550 = dma.done.wait [#allocation7], 1024  }
  0x40   :  { %551 = vsyncadd [#allocation7], 4294966272 }
  0x41   :  { %552 = dma.done.wait [#allocation5], 16  }
  0x42   :  { %553 = vsyncadd [#allocation5], 4294967280 }
  0x43   :  { %554 = dma.done.wait [#allocation7], 512  }
  0x44   :  { %555 = vsyncadd [#allocation7], 4294966784 }
  0x45   :  { %75 = sfence }
  0x46   :  { %v77_v0 = vld [vmem:[#allocation6] sm:$0xff]  ;;  %v78_v1 = vld [vmem:[#allocation6 + $0x8] sm:$0xff]  ;;  %v79_v2 = vld [vmem:[#allocation6 + $0x10] sm:$0xff]  ;;  %v564_v3 = vmov 0.0|0.0   ;;  %vm565_vm0 = vmmov 0   ;;  %v566_v6 = vmov 0.0  }
  0x47   :  { %420 = vmatprep.subr.bf16.mxu0 %v564_v3  ;;  %v421_v4 = vpack.c.bf16 %v78_v1, %v77_v0  ;;  %v80_v5 = vld [vmem:[#allocation6 + $0x18] sm:$0xff]  ;;  %395 = vmatprep.mubr.msk.f32.mxu0 %vm565_vm0, %v566_v6  ;;  %vm88_vm1 = vcmask 261120   ;;  %v170_v9 = vld [vmem:[#allocation6 + $0x20] sm:$0xff]  ;;  %v171_v10 = vld [vmem:[#allocation6 + $0x28] sm:$0xff]  ;;  %s165_s4 = sld [smem:[#allocation8]]  ;;  %s369_s15 = sld [smem:[#allocation8 + $0x1]] }
  0x48   :  { %426 = vmatprep.subr.bf16.mxu1 %v564_v3  ;;  %406 = vmatprep.mubr.msk.f32.mxu1 %vm565_vm0, %v566_v6  ;;  %v424_v7 = vpack.c.bf16 %v80_v5, %v79_v2  ;;  %v76_v8 = vld [vmem:[#allocation2] sm:$0xff]  ;;  %v427_v11 = vpack.c.bf16 %v171_v10, %v170_v9  ;;  %v172_v12 = vld [vmem:[#allocation6 + $0x30] sm:$0xff]  ;;  %v262_v24 = vld [vmem:[#allocation9] sm:$0xff]  ;;  %s567_s20 = smov [#allocation10]  }
  0x49   :  { %422 = vmatpush3.bf16.msra.mxu0 %v421_v4  ;;  %v173_v13 = vld [vmem:[#allocation6 + $0x38] sm:$0xff]  ;;  %v263_v25 = vld [vmem:[#allocation9 + $0x8] sm:$0xff]  ;;  %v264_v27 = vld [vmem:[#allocation9 + $0x10] sm:$0xff]  ;;  %s353_s21 = sshll.u32 %s567_s20, 4  ;;  %s354_s21 = int_to_ptr.vmem [resolvable:$true] %s353_s21 }
  0x4a   :  { %423 = vmatprep.subr.bf16.mxu0 %v564_v3  ;;  %428 = vmatpush3.bf16.msra.mxu1 %v427_v11  ;;  %v430_v14 = vpack.c.bf16 %v173_v13, %v172_v12  ;;  %v364_v15 = vld [vmem:[%s674_s2] ss:$0 sm:$0xff]  ;;  %v433_v26 = vpack.c.bf16 %v263_v25, %v262_v24  ;;  %v367_v30 = vld [vmem:[%s674_s2 + $0x1] ss:$0 sm:$0xff]  ;;  %s526_s2 = scalar_lea.vmem %s354_s21, 128  ;;  %p531_p2 = scmp.lt.s32.totalorder %s354_s21, %s354_s21 }
  0x4b   :  { %429 = vmatprep.subr.bf16.mxu1 %v564_v3  ;;  %v265_v28 = vld [vmem:[#allocation9 + $0x18] sm:$0xff]  ;;  %p527_p1 = scmp.ne.s32.totalorder %s354_s21, %s526_s2  ;;  %p532_p3 = scmp.lt.s32.totalorder %s526_s2, %s526_s2 }
  0x4c   :  { %v436_v29 = vpack.c.bf16 %v265_v28, %v264_v27  ;;  %v370_v39 = vld [vmem:[%s677_s5] ss:$0 sm:$0xff] }
  0x4d   :  { %425 = vmatpush3.bf16.msra.mxu0 %v424_v7  ;;  %v166_v20 = vstv %s165_s4  ;;  %v259_v35 = vstv %s369_s15  ;;  %p533_p4 = por %p532_p3, %p531_p2 }
  0x4e   :  { %432 = vmatprep.subr.bf16.mxu0 %v564_v3  ;;  %431 = vmatpush3.bf16.msra.mxu1 %v430_v14 }
  0x4f   :  { %p534_p5 = pnand %p533_p4, %p527_p1 }
  0x50   :  { %396 = vmatmul.mubr.msk.f32.vlgmr.msra.gmra.mrb[0].mxu0 %vm88_vm1, %v76_v8 }
  0x51   :  { %417 = vmatprep.mubr.msk.f32.mxu0 %vm565_vm0, %v566_v6  ;;  %434 = vmatpush3.bf16.msra.mxu0 %v433_v26 }
  0x52   :  { %435 = vmatprep.subr.bf16.mxu0 %v564_v3 }
  0x55   :  { %437 = vmatpush3.bf16.msra.mxu0 %v436_v29 }
 0x123   :  { %v158_v16 = vpop.f32.mrb[0].mxu0 }
 0x124   :  { %v159_v17 = vadd.f32 %v364_v15, %v158_v16  ;;  %v397_v18 = vpop.f32.mrb[1].mxu0 }
 0x126   :  { %vm162_vm2 = vcmp.ge.f32.partialorder %v159_v17, 0.0  ;;  %v163_v19 = vmul.f32 0.01, %v159_v17 }
 0x128   :  { %v164_v21 = vsel %vm162_vm2, %v159_v17, %v163_v19 }
 0x129   :  { %v167_v22 = vmul.f32 %v166_v20, %v164_v21 }
 0x12b   :  { %v168_v23 = vadd.f32 %v167_v22, %v76_v8 }
 0x12d   :  { %407 = vmatmul.mubr.msk.f32.vlgmr.msra.gmra.mrb[0].mxu1 %vm88_vm1, %v168_v23 }
 0x200   :  { %v251_v31 = vpop.f32.mrb[0].mxu1 }
 0x201   :  { %v252_v32 = vadd.f32 %v367_v30, %v251_v31  ;;  %v408_v33 = vpop.f32.mrb[1].mxu1 }
 0x203   :  { %vm255_vm3 = vcmp.ge.f32.partialorder %v252_v32, 0.0  ;;  %v256_v34 = vmul.f32 0.01, %v252_v32 }
 0x205   :  { %v257_v36 = vsel %vm255_vm3, %v252_v32, %v256_v34 }
 0x206   :  { %v260_v37 = vmul.f32 %v259_v35, %v257_v36 }
 0x208   :  { %v261_v38 = vadd.f32 %v260_v37, %v168_v23 }
 0x20a   :  { %418 = vmatmul.mubr.msk.f32.vlgmr.msra.gmra.mrb[2].mxu0 %vm88_vm1, %v261_v38 }
 0x2dd   :  { %v342_v40 = vpop.f32.mrb[2].mxu0 }
 0x2de   :  { %v343_v41 = vadd.f32 %v370_v39, %v342_v40  ;;  %v419_v42 = vpop.f32.mrb[3].mxu0 }
 0x2e0   :  { %346 = vst [vmem:[#allocation10] sm:$0xff] %v343_v41 }
 0x2e1   :  { %537 = shalt.err (!%p534_p5)
}
 0x2e2   :  { %s538_s3 = scalar_lea.hbm %s678_s6, 128 }
 0x2e3   :  { %p539_p6 = scmp.ne.s32.totalorder %s678_s6, %s538_s3  ;;  %p542_p7 = scmp.lt.u32.totalorder %s538_s3, %s678_s6 }
 0x2e5   :  { %p544_p8 = pnand %p542_p7, %p539_p6 }
 0x2e7   :  { %547 = shalt.err (!%p544_p8)
}
 0x2e8   :  { %356 = dma.vmem_to_hbm [thread:$0]  %s354_s21, 128, %s678_s6, [#allocation4]  }
 0x2e9   :  { %556 = dma.done.wait [#allocation4], 128  }
 0x2ea   :  { %557 = vsyncadd [#allocation4], 4294967168 }
 0x2eb   :  { %360 = vsyncpa [#allocation3], 1 }
 0x2ec   :  { %361 = vsyncpa [#allocation7], 1 }
 0x2ed   :  { %362 = vsyncpa [#allocation4], 1 }
 0x2ee   :  { %363 = vsyncpa [#allocation5], 1 }

</bundles_post_ra>
